<compile_context>
chip_gen: v7x
topology: tpu7x:2x2x1
jax: 0.10.0
libtpu: 0.0.40
codegen_flags: <defaults>
</compile_context>

<pallas_src>
from functools import lru_cache

import numpy as np
import jax
import jax.numpy as jnp
from jax.experimental import pallas as pl
from jax.experimental.pallas import tpu as pltpu

# ---------------------------------------------------------------------------
# Tiling constants
# ---------------------------------------------------------------------------
TN_MAX = 2048   # max point-dim tile (rows per grid step)
TN_MIN = 256    # min point-dim tile (multiple of 8 sublanes, MXU friendly)
CPAD = 128      # channel padding quantum (lane width)
VMEM_LIMIT = 48 * 1024 * 1024   # keep the plan <= ~48 MiB (v7x has 64 MiB phys)

# SparseResUNet42 channel plan: [stem] + encoder + decoder
NC = [32, 32, 64, 128, 256, 256, 128, 96, 96]


def _round_up(n, m):
    return ((n + m - 1) // m) * m


def _pick_tile(n_out):
    """Adaptive point tile: aim for >= 2 tiles (v7x megacore), cap at TN_MAX."""
    n = max(int(n_out), 1)
    if n <= TN_MIN:
        return TN_MIN
    half = -(-n // 2)
    return int(min(TN_MAX, _round_up(half, TN_MIN)))


# ---------------------------------------------------------------------------
# Pallas kernels:  out[i] = sum_k gathered[k, i] @ weight[k] + bias
# grid = (n_tiles, K); K (reduction) last; the output block is revisited across
# k, so it stays resident in VMEM and acts as the accumulator (no scratch).
# Weights are a single full-K VMEM-resident block (constant index map).
# ---------------------------------------------------------------------------
def _spconv_gemm_kernel(g_ref, w_ref, b_ref, o_ref):
    k = pl.program_id(1)

    @pl.when(k == 0)
    def _init():
        o_ref[...] = jnp.broadcast_to(b_ref[...], o_ref.shape)

    o_ref[...] += jnp.dot(g_ref[...], w_ref[k],
                          preferred_element_type=jnp.float32)


def _spconv_gemm_k1_kernel(g_ref, w_ref, b_ref, o_ref):
    # K == 1 fast path (shortcut / header convs): single dot, bias fused.
    o_ref[...] = jnp.dot(g_ref[...], w_ref[...],
                         preferred_element_type=jnp.float32) + b_ref[...]


@lru_cache(maxsize=None)
def _get_spconv_gemm(Kf, n_tiles, tn, cin_eff, coutp):
    """Cached pallas_call builder -> one Mosaic compile per distinct shape."""
    npad = n_tiles * tn
    if Kf == 1:
        fn = pl.pallas_call(
            _spconv_gemm_k1_kernel,
            out_shape=jax.ShapeDtypeStruct((npad, coutp), jnp.float32),
            grid_spec=pltpu.PrefetchScalarGridSpec(
                num_scalar_prefetch=0,
                grid=(n_tiles,),
                in_specs=[
                    pl.BlockSpec((tn, cin_eff), lambda i: (i, 0)),
                    pl.BlockSpec((cin_eff, coutp), lambda i: (0, 0)),
                    pl.BlockSpec((1, coutp), lambda i: (0, 0)),
                ],
                out_specs=pl.BlockSpec((tn, coutp), lambda i: (i, 0)),
            ),
            compiler_params=pltpu.CompilerParams(
                dimension_semantics=("parallel",),
                vmem_limit_bytes=VMEM_LIMIT),
        )
    else:
        fn = pl.pallas_call(
            _spconv_gemm_kernel,
            out_shape=jax.ShapeDtypeStruct((npad, coutp), jnp.float32),
            grid_spec=pltpu.PrefetchScalarGridSpec(
                num_scalar_prefetch=0,
                grid=(n_tiles, Kf),
                in_specs=[
                    # gathered neighbours: one (tn, cin_eff) slab per (i, k)
                    pl.BlockSpec((None, tn, cin_eff), lambda i, k: (k, i, 0)),
                    # full-K weight tensor: constant block -> fetched once,
                    # stays resident in VMEM for the whole grid
                    pl.BlockSpec((Kf, cin_eff, coutp), lambda i, k: (0, 0, 0)),
                    pl.BlockSpec((1, coutp), lambda i, k: (0, 0)),
                ],
                out_specs=pl.BlockSpec((tn, coutp), lambda i, k: (i, 0)),
            ),
            compiler_params=pltpu.CompilerParams(
                dimension_semantics=("parallel", "arbitrary"),
                vmem_limit_bytes=VMEM_LIMIT),
        )
    return jax.jit(fn)


# ---------------------------------------------------------------------------
# Padded / folded weight + bias cache (device arrays, built once per layer).
# Keyed by id() of the parameter arrays held alive by the model object.
# ---------------------------------------------------------------------------
_WCACHE = {}


def _prepare_weight(weight, bias, K, Kp, Kf, cin, cout, cinp, coutp, fold):
    key = (id(weight), None if bias is None else id(bias),
           Kp, cin, cout, cinp, coutp, fold)
    hit = _WCACHE.get(key)
    if hit is not None:
        return hit
    wpad = jnp.zeros((Kp, cinp, coutp), jnp.bfloat16)
    wpad = wpad.at[:K, :cin, :cout].set(jnp.asarray(weight, jnp.bfloat16))
    if Kf == 1:
        w = wpad.reshape(fold * cinp, coutp)
    else:
        w = wpad.reshape(Kf, fold * cinp, coutp)
    b = jnp.zeros((1, coutp), jnp.float32)
    if bias is not None:
        b = b.at[0, :cout].set(jnp.asarray(bias, jnp.float32))
    _WCACHE[key] = (w, b)
    return w, b


# ---------------------------------------------------------------------------
# Sparse conv = (host-built kernel map) gather + Pallas GEMM accumulate.
# kmap: (K, n_out) int32 indices into the input feature rows; value == n_in
# means "no neighbour" (routes to an all-zero sentinel row).
# ---------------------------------------------------------------------------
def sparse_conv(feats, kmap, weight, bias=None):
    feats = jnp.asarray(feats, jnp.float32)
    n_in, cin = feats.shape
    kmap = np.asarray(kmap, dtype=np.int32)
    K, n_out = kmap.shape
    cout = weight.shape[-1]

    cinp = _round_up(max(cin, 1), CPAD)
    coutp = _round_up(max(cout, 1), CPAD)

    tn = _pick_tile(n_out)
    npad = _round_up(max(n_out, 1), tn)
    n_tiles = npad // tn

    # Fold pairs of kernel offsets into a 256-deep contraction on the
    # 128-channel layers (full MXU depth on v6e/v7x, half the grid steps).
    fold = 2 if (K > 1 and cinp <= 128) else 1
    Kp = _round_up(K, fold)
    Kf = Kp // fold
    cin_eff = fold * cinp

    fbf = feats.astype(jnp.bfloat16)

    # K == 1 convs in this net use the identity kernel map -> skip the gather.
    identity = (K == 1 and n_in == n_out
                and np.array_equal(kmap[0], np.arange(n_out)))
    if identity:
        # TODO(synk): keep a persistent lane-padded bf16 activation buffer
        # between layers to avoid this extra padded copy per K==1 conv.
        gathered = jnp.zeros((npad, cinp), jnp.bfloat16).at[:n_in, :cin].set(fbf)
    else:
        # TODO(synk): move this neighbour gather into the Pallas kernel (SMEM
        # kmap prefetch) to kill the Kx HBM read amplification.
        fz = jnp.zeros((n_in + 1, cinp), jnp.bfloat16).at[:n_in, :cin].set(fbf)
        idx = np.full((Kp, npad), n_in, dtype=np.int32)
        idx[:K, :n_out] = kmap
        if fold > 1:
            # (Kf, npad, fold): contiguous channel-concat after the gather,
            # so the reshape below is copy-free.
            idx = np.ascontiguousarray(idx.reshape(Kf, fold, npad).transpose(0, 2, 1))
            gathered = jnp.take(fz, jnp.asarray(idx), axis=0)   # (Kf,npad,fold,cinp)
            gathered = gathered.reshape(Kf, npad, cin_eff)
        else:
            gathered = jnp.take(fz, jnp.asarray(idx), axis=0)   # (Kf, npad, cinp)
        if Kf == 1:
            gathered = gathered.reshape(npad, cin_eff)

    w, b = _prepare_weight(weight, bias, K, Kp, Kf, cin, cout, cinp, coutp, fold)

    gemm = _get_spconv_gemm(Kf, n_tiles, tn, cin_eff, coutp)
    out = gemm(gathered, w, b)
    return out[:n_out, :cout]


# ---------------------------------------------------------------------------
# Host-side coordinate / rulebook helpers (integer addressing, no FLOPs).
# torchsparse builds these kernel maps with on-device hash tables; here they
# are built host-side with vectorized numpy.
# ---------------------------------------------------------------------------
def offset2batch(offset):
    offset = np.asarray(offset, dtype=np.int64)
    counts = np.diff(np.concatenate([[0], offset]))
    return np.repeat(np.arange(len(offset)), counts).astype(np.int32)


def offsets_k3(t):
    return [(dx, dy, dz) for dx in (-t, 0, t) for dy in (-t, 0, t) for dz in (-t, 0, t)]


def offsets_k2(t):
    return [(dx, dy, dz) for dx in (0, t) for dy in (0, t) for dz in (0, t)]


def offsets_k2_T(t):
    return [(-dx, -dy, -dz) for (dx, dy, dz) in offsets_k2(t)]


def _encode(c):
    # pack (b, x, y, z) into one int64 key; spatial coords biased to stay >= 0.
    c = c.astype(np.int64)
    B = np.int64(1) << 15
    s = c[:, 1:] + B
    assert np.all((s >= 0) & (s < (np.int64(1) << 16))), \
        "spatial coordinate (plus kernel offset) out of 16-bit key range"
    return (c[:, 0] * (np.int64(1) << 48)
            + s[:, 0] * (np.int64(1) << 32)
            + s[:, 1] * (np.int64(1) << 16)
            + s[:, 2])


def build_kmap(in_coords, out_coords, offsets):
    """(K, n_out) int32 indices into input rows; value n_in == missing."""
    in_coords = np.asarray(in_coords, dtype=np.int64)
    out_coords = np.asarray(out_coords, dtype=np.int64)
    n_in = in_coords.shape[0]

    in_keys = _encode(in_coords)
    order = np.argsort(in_keys, kind='stable').astype(np.int64)
    skeys = in_keys[order]

    offs = np.asarray(offsets, dtype=np.int64)                 # (K, 3)
    K, n_out = offs.shape[0], out_coords.shape[0]
    shifted = np.empty((K, n_out, 4), dtype=np.int64)
    shifted[:, :, 0] = out_coords[None, :, 0]
    shifted[:, :, 1:] = out_coords[None, :, 1:] + offs[:, None, :]
    qkeys = _encode(shifted.reshape(-1, 4)).reshape(K, n_out)

    pos = np.searchsorted(skeys, qkeys)
    posc = np.clip(pos, 0, n_in - 1)
    found = skeys[posc] == qkeys
    return np.where(found, order[posc], n_in).astype(np.int32)


def downsample_coords(coords, t_in):
    s = 2 * t_in
    q = coords.copy()
    q[:, 1:] = (q[:, 1:] // s) * s
    _, first = np.unique(q, axis=0, return_index=True)
    return q[np.sort(first)]


# ---------------------------------------------------------------------------
# Elementwise / normalization glue (tiny vs. the GEMMs); f32 statistics.
# spnn.BatchNorm in train mode -> per-channel batch stats, eps=1e-5,
# gamma=1, beta=0 per _init_weights.
# ---------------------------------------------------------------------------
def batchnorm(x, bn, eps=1e-5):
    mean = jnp.mean(x, axis=0, keepdims=True)
    var = jnp.mean((x - mean) ** 2, axis=0, keepdims=True)
    return (x - mean) * jax.lax.rsqrt(var + eps) * bn['gamma'] + bn['beta']


def relu(x):
    return jnp.maximum(x, 0.0)


# ---------------------------------------------------------------------------
# Deterministic synthetic parameters (shapes from SparseResUNet42 + header).
# ---------------------------------------------------------------------------
def init_params(key, in_channels=4, num_classes=2):
    counter = [0]

    def nk():
        counter[0] += 1
        return jax.random.fold_in(key, counter[0])

    def conv_p(K, cin, cout):
        std = (1.0 / (K * cin)) ** 0.5
        return std * jax.random.normal(nk(), (K, cin, cout), jnp.float32)

    def bn_p(c):
        return {'gamma': jnp.ones((1, c), jnp.float32),
                'beta': jnp.zeros((1, c), jnp.float32)}

    def res_p(cin, cout):
        p = {'w1': conv_p(27, cin, cout), 'bn1': bn_p(cout),
             'w2': conv_p(27, cout, cout), 'bn2': bn_p(cout)}
        if cin != cout:
            p['sc_w'] = conv_p(1, cin, cout)
            p['sc_bn'] = bn_p(cout)
        return p

    params = {
        'stem': [
            {'w': conv_p(27, in_channels, NC[0]), 'bn': bn_p(NC[0])},
            {'w': conv_p(27, NC[0], NC[0]), 'bn': bn_p(NC[0])},
        ],
        'enc': [],
        'dec': [],
    }
    for k in range(4):
        params['enc'].append({
            'down_w': conv_p(8, NC[k], NC[k]), 'down_bn': bn_p(NC[k]),
            'res1': res_p(NC[k], NC[k + 1]),
            'res2': res_p(NC[k + 1], NC[k + 1]),
        })
    for k in range(4):
        params['dec'].append({
            'up_w': conv_p(8, NC[4 + k], NC[5 + k]), 'up_bn': bn_p(NC[5 + k]),
            'res1': res_p(NC[5 + k] + NC[3 - k], NC[5 + k]),
            'res2': res_p(NC[5 + k], NC[5 + k]),
        })
    params['head_w'] = conv_p(1, NC[8], num_classes)
    params['head_b'] = jnp.zeros((num_classes,), jnp.float32)
    return params


# ---------------------------------------------------------------------------
# Forward pass of SparseUnetSeg (returns output.F, shape (N, num_classes)).
# ---------------------------------------------------------------------------
def sparse_unet_seg_forward(params, data_dict):
    coords_xyz = np.asarray(data_dict['discrete_coord'], dtype=np.int64)
    feat = jnp.asarray(data_dict['feat'], dtype=jnp.float32)
    offset = np.asarray(data_dict['offset'])
    batch = offset2batch(offset)
    coords = np.concatenate([batch[:, None], coords_xyz], axis=1)  # (N,4) [b,x,y,z]

    # coordinate hierarchy, tensor stride 2**l at level l
    level_coords = [coords]
    for l in range(4):
        level_coords.append(downsample_coords(level_coords[l], 2 ** l))

    kmap3 = [build_kmap(level_coords[l], level_coords[l], offsets_k3(2 ** l)) for l in range(5)]
    kmap1 = [np.arange(level_coords[l].shape[0], dtype=np.int32)[None, :] for l in range(5)]
    kmap_dn = [build_kmap(level_coords[l], level_coords[l + 1], offsets_k2(2 ** l)) for l in range(4)]
    kmap_up = [build_kmap(level_coords[l + 1], level_coords[l], offsets_k2_T(2 ** l)) for l in range(4)]

    conv = sparse_conv

    def conv_bn_relu(x, kmap, w, bn):
        return relu(batchnorm(conv(x, kmap, w), bn))

    def res_block(x, p, k3, k1):
        m = relu(batchnorm(conv(x, k3, p['w1']), p['bn1']))
        m = batchnorm(conv(m, k3, p['w2']), p['bn2'])
        if 'sc_w' in p:
            s = batchnorm(conv(x, k1, p['sc_w']), p['sc_bn'])
        else:
            s = x
        return relu(m + s)

    # stem (level 0)
    x = feat
    for st in params['stem']:
        x = conv_bn_relu(x, kmap3[0], st['w'], st['bn'])

    # encoders
    xs = [x]
    for k in range(4):
        p = params['enc'][k]
        x = conv_bn_relu(xs[-1], kmap_dn[k], p['down_w'], p['down_bn'])
        x = res_block(x, p['res1'], kmap3[k + 1], kmap1[k + 1])
        x = res_block(x, p['res2'], kmap3[k + 1], kmap1[k + 1])
        xs.append(x)

    # decoders (decoder k upsamples level 4-k -> 3-k, fuses skip from level 3-k)
    y = xs[4]
    for k in range(4):
        lvl = 3 - k
        p = params['dec'][k]
        u = conv_bn_relu(y, kmap_up[lvl], p['up_w'], p['up_bn'])
        z = jnp.concatenate([u, xs[lvl]], axis=1)
        z = res_block(z, p['res1'], kmap3[lvl], kmap1[lvl])
        y = res_block(z, p['res2'], kmap3[lvl], kmap1[lvl])

    # header: 1x1x1 sparse conv with bias (pure per-point matmul, K==1 path)
    out = conv(y, kmap1[0], params['head_w'], params['head_b'])
    return out


class SparseUnetSegPallas:
    def __init__(self, in_channels=4, num_classes=2, seed=0):
        self.params = init_params(jax.random.PRNGKey(seed), in_channels, num_classes)

    def __call__(self, data_dict):
        return sparse_unet_seg_forward(self.params, data_dict)


# ---------------------------------------------------------------------------
if __name__ == "__main__":
    key = jax.random.PRNGKey(0)
    kc, kf = jax.random.split(key)

    B, n_per_batch, grid = 2, 32, 32
    N = B * n_per_batch

    # unique voxel coordinates per batch (deterministic)
    coords_list = []
    for b in range(B):
        lin = np.asarray(jax.random.permutation(jax.random.fold_in(kc, b),
                                                grid ** 3)[:n_per_batch])
        xyz = np.stack([lin // (grid * grid), (lin // grid) % grid, lin % grid], axis=1)
        coords_list.append(xyz)
    discrete_coord = np.concatenate(coords_list, axis=0).astype(np.int32)   # (N, 3)

    feat = jax.random.normal(kf, (N, 4), jnp.float32)                        # (N, 4)
    offset = np.array([n_per_batch, 2 * n_per_batch], dtype=np.int32)        # cumulative

    data_dict = {'discrete_coord': discrete_coord, 'feat': feat, 'offset': offset}

    model = SparseUnetSegPallas(in_channels=4, num_classes=2, seed=0)
    out = model(data_dict)
    out = jax.block_until_ready(out)

    assert out.shape == (N, 2), out.shape
    assert np.all(np.isfinite(np.asarray(out)))
    print("KERNEL_OK")
</pallas_src>

<mosaic_0001>
module attributes {stable_mosaic.version = 11 : i64} {
  func.func @_spconv_gemm_kernel(%arg0: i32, %arg1: i32, %arg2: memref<1x256x256xbf16, #tpu.memory_space<vmem>>, %arg3: memref<14x256x128xbf16, #tpu.memory_space<vmem>>, %arg4: memref<1x128xf32, #tpu.memory_space<vmem>>, %arg5: memref<256x128xf32, #tpu.memory_space<vmem>>) attributes {dimension_semantics = [#tpu.dimension_semantics<parallel>, #tpu.dimension_semantics<arbitrary>], iteration_bounds = array<i64: 1, 14>, scalar_prefetch = 0 : i64, scratch_operands = 0 : i64, tpu.core_type = #tpu.core_type<tc>, window_params = [{transform_indices = @transform_0, window_bounds = array<i64: 1, 256, 256>}, {pipeline_mode = #tpu.pipeline_mode<synchronous>, transform_indices = @transform_1, window_bounds = array<i64: 14, 256, 128>}, {pipeline_mode = #tpu.pipeline_mode<synchronous>, transform_indices = @transform_2, window_bounds = array<i64: 1, 128>}, {transform_indices = @transform_3, window_bounds = array<i64: 256, 128>}]} {
    %c0_i32 = arith.constant 0 : i32
    %0 = arith.cmpi eq, %arg1, %c0_i32 : i32
    %1 = arith.extui %0 : i1 to i32
    %c0_i32_0 = arith.constant 0 : i32
    %2 = arith.cmpi ne, %1, %c0_i32_0 : i32
    scf.if %2 {
      %c0_9 = arith.constant 0 : index
      %c0_10 = arith.constant 0 : index
      %12 = vector.load %arg4[%c0_9, %c0_10] : memref<1x128xf32, #tpu.memory_space<vmem>>, vector<1x128xf32>
      %13 = vector.shape_cast %12 : vector<1x128xf32> to vector<1x128xf32>
      %14 = vector.broadcast %13 : vector<1x128xf32> to vector<256x128xf32>
      %c0_11 = arith.constant 0 : index
      %c0_12 = arith.constant 0 : index
      %15 = vector.load %arg5[%c0_11, %c0_12] : memref<256x128xf32, #tpu.memory_space<vmem>>, vector<256x128xf32>
      tpu.vector_store %arg5[%c0_11, %c0_12], %14 {strides = array<i32>} : memref<256x128xf32, #tpu.memory_space<vmem>>, vector<256x128xf32>,
    } else {
    }
    %c0 = arith.constant 0 : index
    %c0_1 = arith.constant 0 : index
    %3 = vector.load %arg5[%c0, %c0_1] : memref<256x128xf32, #tpu.memory_space<vmem>>, vector<256x128xf32>
    %c0_2 = arith.constant 0 : index
    %c0_3 = arith.constant 0 : index
    %c0_4 = arith.constant 0 : index
    %4 = vector.load %arg2[%c0_2, %c0_3, %c0_4] : memref<1x256x256xbf16, #tpu.memory_space<vmem>>, vector<1x256x256xbf16>
    %5 = vector.shape_cast %4 : vector<1x256x256xbf16> to vector<256x256xbf16>
    %6 = arith.index_cast %arg1 : i32 to index
    %c0_5 = arith.constant 0 : index
    %c0_6 = arith.constant 0 : index
    %7 = vector.load %arg3[%6, %c0_5, %c0_6] : memref<14x256x128xbf16, #tpu.memory_space<vmem>>, vector<1x256x128xbf16>
    %8 = vector.shape_cast %7 : vector<1x256x128xbf16> to vector<256x128xbf16>
    %cst = arith.constant dense<0.000000e+00> : vector<256x128xf32>
    %9 = tpu.matmul %5, %8, %cst {dimension_numbers = #tpu.dot_dimension_numbers<[1], [0], [0], [1], [0, 0, 1, 1], [], []>} : vector<256x256xbf16>, vector<256x128xbf16>, vector<256x128xf32> -> vector<256x128xf32>
    %10 = arith.addf %3, %9 : vector<256x128xf32>
    %c0_7 = arith.constant 0 : index
    %c0_8 = arith.constant 0 : index
    %11 = vector.load %arg5[%c0_7, %c0_8] : memref<256x128xf32, #tpu.memory_space<vmem>>, vector<256x128xf32>
    tpu.vector_store %arg5[%c0_7, %c0_8], %10 {strides = array<i32>} : memref<256x128xf32, #tpu.memory_space<vmem>>, vector<256x128xf32>,
    return
  }
  func.func @transform_0(%arg0: i32, %arg1: i32) -> (i32, i32, i32) {
    %c0_i32 = arith.constant 0 : i32
    %c0_i32_0 = arith.constant 0 : i32
    return %arg1, %arg0, %c0_i32 : i32, i32, i32
  }
  func.func @transform_1(%arg0: i32, %arg1: i32) -> (i32, i32, i32) {
    %c0_i32 = arith.constant 0 : i32
    %c0_i32_0 = arith.constant 0 : i32
    %c0_i32_1 = arith.constant 0 : i32
    %c0_i32_2 = arith.constant 0 : i32
    return %c0_i32, %c0_i32_0, %c0_i32_1 : i32, i32, i32
  }
  func.func @transform_2(%arg0: i32, %arg1: i32) -> (i32, i32) {
    %c0_i32 = arith.constant 0 : i32
    %c0_i32_0 = arith.constant 0 : i32
    %c0_i32_1 = arith.constant 0 : i32
    return %c0_i32, %c0_i32_0 : i32, i32
  }
  func.func @transform_3(%arg0: i32, %arg1: i32) -> (i32, i32) {
    %c0_i32 = arith.constant 0 : i32
    %c0_i32_0 = arith.constant 0 : i32
    return %arg0, %c0_i32 : i32, i32
  }
}

</mosaic_0001>

<bundles_post_ra>
// kernel: tpu_custom_call.1
= control target key start
LH: loop header
LB: loop body
LE: loop exit
PB: predicated region body
PF: predicated region fallthrough
CT: control target
= control target key end

     0   :  { %8 = vsyncpa [#allocation3], 0  ;;  %s1775_s0 = inlined_call_operand.hbm [shape: bf16[14,256,256], index: 0, kind: input, shape index: {}]   ;;  %s1776_s1 = inlined_call_operand.hbm [shape: bf16[14,256,128], index: 1, kind: input, shape index: {}]   ;;  %s1777_s2 = inlined_call_operand.hbm [shape: f32[1,128], index: 2, kind: input, shape index: {}]   ;;  %s1778_s3 = inlined_call_operand.hbm [shape: f32[256,128], index: 3, kind: output, shape index: {}]  }
   0x1   :  { %10 = vsyncpa [#allocation3 + $0x1], 0 }
   0x2   :  { %11 = vsyncpa [#allocation6], 0 }
   0x3   :  { %12 = vsyncpa [#allocation4], 0  ;;  %s1502_s12 = smov 0   ;;  %s1504_s13 = smov 0  }
   0x4   :  { %s1506_s14 = smov 0   ;;  %s1508_s15 = smov 0  }
   0x5   :  { %s1510_s16 = smov 0   ;;  %s1512_s17 = smov 0  }
   0x6 LB: > { %s949_s18 = sadd.s32 4294967295, %s1470_s17   ;;  %p52_p0 = scmp.ne.s32.totalorder %s1454_s13, %s1450_s12  ;;  %s1470_s17 = sphi %s1512_s17, %s18_s17   ;;  %s1466_s16 = sphi %s1510_s16, %s1797_s16   ;;  %s1462_s15 = sphi %s1508_s15, %s1796_s15   ;;  %s1458_s14 = sphi %s1506_s14, %s1795_s14   ;;  %s1454_s13 = sphi %s1504_s13, %s1794_s13   ;;  %s1450_s12 = sphi %s1502_s12, %s1793_s12  }
   0x7   : > { %p1534_p1 = scmp.eq.s32.totalorder %s949_s18, 0  ;;  %p950_p2 = scmp.ge.s32.totalorder %s1470_s17, 1 }
   0x8   : > { %p131_p3 = scmp.lt.s32.totalorder %s1470_s17, 15  ;;  %s1472_s22 = smov [#allocation5]  }
   0x9   : > { %s1783_s19 = scalar_select %p1534_p1, 1, 0 }
   0xa   : > { %p1542_p4 = por %p1534_p1, %p52_p0  ;;  %p1546_p5 = pnand %p950_p2, %p131_p3 }
   0xb   : > { %s143_s23 = sshll.u32 %s1472_s22, 4  ;;  %s1473_s25 = smov [#allocation7]   ;;  %s144_s23 = int_to_ptr.vmem [resolvable:$true] %s143_s23 }
   0xc   : > { %s1784_s20 = scalar_select %p1542_p4, 1, 0 }
   0xd   : > { %s1785_s21 = scalar_select %p1546_p5, 1, 0 }
   0xe   : > { %p1161_p6 = pneg %p1546_p5  ;;  %s157_s26 = sshll.u32 %s1473_s25, 4  ;;  %s1558_s26 = int_to_ptr.vmem [resolvable:$true] %s157_s26 }
   0xf   : > { %s1300_s29 = scalar_lea.hbm %s1776_s1, 28672 }
  0x10   : > { %p1554_p7 = pnand %p1161_p6, %p1534_p1  ;;  %p1301_p8 = scmp.ne.s32.totalorder %s1776_s1, %s1300_s29 }
  0x11   : > { %p1307_p12 = scmp.lt.u32.totalorder %s1300_s29, %s1776_s1 }
  0x12   : > { %p1302_p9 = pneg %p1554_p7 }
  0x14   : > { %p1303_p10 = pnand %p1302_p9, %p1301_p8 }
  0x16   : > { %p1304_p11 = pneg %p1303_p10 }
  0x18   : > { %p1309_p13 = pnand %p1307_p12, %p1304_p11 }
  0x1a   : > { %1312 = shalt.err (!%p1309_p13)
}
  0x1b   : > { %s1313_s7 = scalar_lea.vmem %s144_s23, 28672  ;;  %p1321_p6 = scmp.lt.s32.totalorder %s144_s23, %s144_s23 }
  0x1c   : > { %p1314_p0 = scmp.ne.s32.totalorder %s144_s23, %s1313_s7  ;;  %p1322_p1 = scmp.lt.s32.totalorder %s1313_s7, %s1313_s7 }
  0x1e   : > { %p1316_p2 = pnand %p1314_p0, %p1302_p9  ;;  %p1323_p4 = por %p1322_p1, %p1321_p6 }
  0x20   : > { %p1317_p3 = pneg %p1316_p2 }
  0x22   : > { %p1324_p5 = pnand %p1323_p4, %p1317_p3 }
  0x24   : > { %1327 = shalt.err (!%p1324_p5)
}
  0x25   : > { %s1474_s8 = smov 64   ;;  %s1475_s9 = smov 4  }
  0x26   : > { %1164 = dma.hbm_to_vmem [thread:$0]  (!%p1554_p7), %s1776_s1, 28672, %s144_s23, [#allocation6], %s1474_s8, %s1474_s8, %s1475_s9  }
  0x27   : > { %s1328_s25 = scalar_lea.hbm %s1777_s2, 16 }
  0x28   : > { %p1329_p8 = scmp.ne.s32.totalorder %s1777_s2, %s1328_s25  ;;  %p1335_p5 = scmp.lt.u32.totalorder %s1328_s25, %s1777_s2 }
  0x2a   : > { %p1331_p1 = pnand %p1329_p8, %p1302_p9 }
  0x2c   : > { %p1332_p4 = pneg %p1331_p1 }
  0x2e   : > { %p1337_p10 = pnand %p1335_p5, %p1332_p4 }
  0x30   : > { %1340 = shalt.err (!%p1337_p10)
}
  0x31   : > { %s1341_s23 = scalar_lea.vmem %s1558_s26, 16  ;;  %s1348_s4 = scalar_lea.vmem %s1558_s26, 32 }
  0x32   : > { %p1342_p11 = scmp.ne.s32.totalorder %s1558_s26, %s1341_s23  ;;  %p1349_p0 = scmp.lt.s32.totalorder %s1558_s26, %s1558_s26 }
  0x33   : > { %p1350_p2 = scmp.lt.s32.totalorder %s1348_s4, %s1341_s23 }
  0x34   : > { %p1344_p12 = pnand %p1342_p11, %p1302_p9 }
  0x35   : > { %p1351_p3 = por %p1350_p2, %p1349_p0 }
  0x36   : > { %p1345_p13 = pneg %p1344_p12 }
  0x38   : > { %p1352_p6 = pnand %p1351_p3, %p1345_p13 }
  0x3a   : > { %1355 = shalt.err (!%p1352_p6)
}
  0x3b   : > { %1167 = dma.hbm_to_vmem [thread:$0]  (!%p1554_p7), %s1777_s2, 16, %s1558_s26, [#allocation6]  }
  0x3c   : > { %s27_s7 = sadd.s32 1, %s1466_s16  ;;  %s39_s8 = sadd.s32 1, %s1458_s14 }
  0x3d   : > { %p28_p9 = scmp.ge.s32.totalorder %s27_s7, 14  ;;  %p46_p8 = scmp.ne.s32.totalorder %s1458_s14, %s1454_s13 }
  0x3e   : > { %p47_p1 = scmp.eq.s32.totalorder %s1470_s17, 0  ;;  %p1174_p4 = scmp.lt.s32.totalorder %s1470_s17, 14 }
  0x3f   : > { %s1799_s7 = smov (%p28_p9, %s27_s7), 0  ;;  %s168_s24 = sand.u32 1, %s1458_s14  }
  0x40   : > { %p48_p5 = por %p47_p1, %p46_p8  ;;  %s34_s9 = ssub.s32 %s1466_s16, %s1799_s7 }
  0x41   : > { %p37_p10 = scmp.eq.s32.totalorder %s34_s9, 0  ;;  %s954_s10 = sshll.u32 %s168_s24, 8 }
  0x42   : > { %s1017_s11 = sshll.u32 %s1466_s16, 12  ;;  %s172_s27 = scalar_lea.vmem [#allocation2], %s954_s10 }
  0x43   : > { %s1621_s12 = scalar_select %p37_p10, %s1458_s14, %s39_s8  }
  0x44   : > { %s1626_s25 = scalar_lea.hbm %s1775_s0, %s1017_s11  ;;  %s182_s28 = sshll.u32 %s172_s27, 4  ;;  %s1628_s28 = int_to_ptr.vmem [resolvable:$true] %s182_s28 }
  0x45   : > { %p1632_p7 = pnand %p1174_p4, %p48_p5  ;;  %s1636_s30 = scalar_lea.sflag [#allocation3], %s168_s24 }
  0x46   : > { %s1356_s23 = scalar_lea.hbm %s1626_s25, 4096  ;;  %s1361_s6 = scalar_lea.hbm %s1775_s0, 57344 }
  0x47   : > { %p1357_p11 = scmp.ne.s32.totalorder %s1626_s25, %s1356_s23  ;;  %p1358_p12 = pneg %p1632_p7 }
  0x48   : > { %p1362_p2 = scmp.lt.u32.totalorder %s1626_s25, %s1775_s0  ;;  %p1363_p3 = scmp.lt.u32.totalorder %s1361_s6, %s1356_s23 }
  0x49   : > { %p1359_p13 = pnand %p1358_p12, %p1357_p11  ;;  %p1365_p9 = scmp.lt.u32.totalorder %s1356_s23, %s1626_s25 }
  0x4a   : > { %p1364_p6 = por %p1363_p3, %p1362_p2 }
  0x4b   : > { %p1360_p0 = pneg %p1359_p13 }
  0x4c   : > { %p1366_p8 = por %p1365_p9, %p1364_p6 }
  0x4e   : > { %p1367_p1 = pnand %p1366_p8, %p1360_p0 }
  0x50   : > { %1370 = shalt.err (!%p1367_p1)
}
  0x51   : > { %s1371_s24 = scalar_lea.vmem %s1628_s28, 4096  ;;  %s1476_s10 = smov [#allocation2]  }
  0x52   : > { %p1372_p4 = scmp.ne.s32.totalorder %s1628_s28, %s1371_s24  ;;  %s1376_s11 = sshll.u32 %s1476_s10, 4  ;;  %s1377_s11 = int_to_ptr.vmem [resolvable:$false] %s1376_s11 }
  0x53   : > { %s1378_s22 = scalar_lea.vmem %s1377_s11, 8192  ;;  %p1379_p11 = scmp.lt.s32.totalorder %s1628_s28, %s1377_s11 }
  0x54   : > { %p1374_p5 = pnand %p1372_p4, %p1358_p12  ;;  %p1380_p13 = scmp.lt.s32.totalorder %s1378_s22, %s1371_s24 }
  0x56   : > { %p1375_p10 = pneg %p1374_p5  ;;  %p1381_p2 = por %p1380_p13, %p1379_p11 }
  0x58   : > { %p1382_p3 = pnand %p1381_p2, %p1375_p10 }
  0x5a   : > { %1385 = shalt.err (!%p1382_p3)
}
  0x5b   : > { %s1477_s26 = smov 128   ;;  %s1478_s27 = smov 8  }
  0x5c   : > { %1171 = dma.hbm_to_vmem [thread:$0]  (!%p1632_p7), %s1626_s25, 4096, %s1628_s28, %s1636_s30, %s1477_s26, %s1477_s26, %s1478_s27  }
  0x5d   : > { %p1788_p12 = scmp.ne.s32.totalorder %s1785_s21, 0 }
  0x5e   : > { %s196_s23 = sand.u32 (!%p1788_p12), 1, %s1454_s13   ;;  %p1789_p0 = scmp.ne.s32.totalorder (!%p1788_p12), %s1784_s20, 0 }
  0x5f   : > { %194 = sbr.rel (%p1788_p12) target bundleno = 450 (0x1c2), region = 32  ;;  %s958_s4 = sshll.u32 (!%p1788_p12), %s196_s23, 8 }
  0x60   : > { %s197_s5 = scalar_lea.sflag (!%p1788_p12), [#allocation3], %s196_s23  ;;  %s1667_s6 = scalar_lea.vmem (!%p1788_p12), [#allocation2], %s958_s4 }
  0x66   : > { %1437 = dma.done.wait (%p1789_p0), %s197_s5, 4096  }
  0x67   : > { %1439 = vsyncadd (%p1789_p0), %s197_s5, 4294963200  ;;  %p1790_p6 = scmp.ne.s32.totalorder %s1783_s19, 0 }
  0x69   : > { %1441 = dma.done.wait (%p1790_p6), [#allocation6], 28688  }
  0x6a   : > { %1443 = vsyncadd (%p1790_p6), [#allocation6], 4294938608  ;;  %p961_p7 = scmp.ne.s32.totalorder %s1462_s15, 0 }
  0x6b   : > { %v962_v0 = vld [vmem:[#allocation7] ss:$0 sm:$0xff] (!%p961_p7) }
  0x6c   : > { %232 = sbr.rel (%p961_p7) target bundleno = 124 (0x7c), region = 48  ;;  %240 = vst [vmem:[#allocation8] sm:$0xff] (!%p961_p7), %v962_v0  ;;  %241 = vst [vmem:[#allocation8 + $0x8] sm:$0xff] (!%p961_p7), %v962_v0 }
  0x6d   : > { %242 = vst [vmem:[#allocation8 + $0x10] sm:$0xff] (!%p961_p7), %v962_v0  ;;  %243 = vst [vmem:[#allocation8 + $0x18] sm:$0xff] (!%p961_p7), %v962_v0 }
  0x6e   : > { %244 = vst [vmem:[#allocation8 + $0x20] sm:$0xff] (!%p961_p7), %v962_v0  ;;  %245 = vst [vmem:[#allocation8 + $0x28] sm:$0xff] (!%p961_p7), %v962_v0 }
  0x6f   : > { %246 = vst [vmem:[#allocation8 + $0x30] sm:$0xff] (!%p961_p7), %v962_v0  ;;  %247 = vst [vmem:[#allocation8 + $0x38] sm:$0xff] (!%p961_p7), %v962_v0 }
  0x70   : > { %248 = vst [vmem:[#allocation8 + $0x40] sm:$0xff] (!%p961_p7), %v962_v0  ;;  %249 = vst [vmem:[#allocation8 + $0x48] sm:$0xff] (!%p961_p7), %v962_v0 }
  0x71   : > { %250 = vst [vmem:[#allocation8 + $0x50] sm:$0xff] (!%p961_p7), %v962_v0  ;;  %251 = vst [vmem:[#allocation8 + $0x58] sm:$0xff] (!%p961_p7), %v962_v0 }
  0x72   : > { %252 = vst [vmem:[#allocation8 + $0x60] sm:$0xff] (!%p961_p7), %v962_v0  ;;  %253 = vst [vmem:[#allocation8 + $0x68] sm:$0xff] (!%p961_p7), %v962_v0 }
  0x73   : > { %254 = vst [vmem:[#allocation8 + $0x70] sm:$0xff] %v962_v0  ;;  %255 = vst [vmem:[#allocation8 + $0x78] sm:$0xff] %v962_v0 }
  0x74   : > { %256 = vst [vmem:[#allocation8 + $0x80] sm:$0xff] %v962_v0  ;;  %257 = vst [vmem:[#allocation8 + $0x88] sm:$0xff] %v962_v0 }
  0x75   : > { %258 = vst [vmem:[#allocation8 + $0x90] sm:$0xff] %v962_v0  ;;  %259 = vst [vmem:[#allocation8 + $0x98] sm:$0xff] %v962_v0 }
  0x76   : > { %260 = vst [vmem:[#allocation8 + $0xa0] sm:$0xff] %v962_v0  ;;  %261 = vst [vmem:[#allocation8 + $0xa8] sm:$0xff] %v962_v0 }
  0x77   : > { %262 = vst [vmem:[#allocation8 + $0xb0] sm:$0xff] %v962_v0  ;;  %263 = vst [vmem:[#allocation8 + $0xb8] sm:$0xff] %v962_v0 }
  0x78   : > { %264 = vst [vmem:[#allocation8 + $0xc0] sm:$0xff] %v962_v0  ;;  %265 = vst [vmem:[#allocation8 + $0xc8] sm:$0xff] %v962_v0 }
  0x79   : > { %266 = vst [vmem:[#allocation8 + $0xd0] sm:$0xff] %v962_v0  ;;  %267 = vst [vmem:[#allocation8 + $0xd8] sm:$0xff] %v962_v0 }
  0x7a   : > { %268 = vst [vmem:[#allocation8 + $0xe0] sm:$0xff] %v962_v0  ;;  %269 = vst [vmem:[#allocation8 + $0xe8] sm:$0xff] %v962_v0 }
  0x7b   : > { %270 = vst [vmem:[#allocation8 + $0xf0] sm:$0xff] %v962_v0  ;;  %271 = vst [vmem:[#allocation8 + $0xf8] sm:$0xff] %v962_v0 }
  0x7c PF: > { %s1018_s19 = sshll.u32 %s1462_s15, 7  ;;  %v1254_v1 = vld [vmem:[%s1667_s6 + $0x4] ss:$8 sps:$4 sm:$0xff]   ;;  %v1252_v19 = vld [vmem:[%s1667_s6] ss:$8 sps:$4 sm:$0xff]   ;;  %s1479_s15 = smov [#allocation8]  }
  0x7d   : > { %s1680_s20 = scalar_lea.vmem [#allocation5], %s1018_s19  ;;  %659 = vmatprep.mubr.bf16.mxu0 %v1254_v1  ;;  %v1257_v13 = vld [vmem:[%s1667_s6 + $0x84] ss:$8 sps:$4 sm:$0xff]   ;;  %v1255_v20 = vld [vmem:[%s1667_s6 + $0x80] ss:$8 sps:$4 sm:$0xff]   ;;  %s861_s21 = sshll.u32 %s1479_s15, 4  ;;  %s862_s21 = int_to_ptr.vmem [resolvable:$true] %s861_s21 }
  0x7e   : > { %v1236_v2 = vld [vmem:[%s1680_s20 + $0x40] sm:$0xff]   ;;  %v1238_v4 = vld [vmem:[%s1680_s20 + $0x48] sm:$0xff]   ;;  %v1240_v6 = vld [vmem:[%s1680_s20 + $0x50] sm:$0xff]   ;;  %723 = vmatprep.mubr.bf16.mxu1 %v1257_v13  ;;  %p1731_p9 = scmp.eq.s32.totalorder %s949_s18, 13  ;;  %s1386_s28 = scalar_lea.vmem %s862_s21, 4096 }
  0x7f   : > { %v1237_v3 = vld [vmem:[%s1680_s20] sm:$0xff]   ;;  %1019 = vmatprep.subr.bf16.mxu0 %v1236_v2  ;;  %1131 = vmatprep.subr.bf16.mxu1 %v1236_v2  ;;  %v1239_v5 = vld [vmem:[%s1680_s20 + $0x8] sm:$0xff]   ;;  %v1241_v7 = vld [vmem:[%s1680_s20 + $0x10] sm:$0xff]   ;;  %p1387_p8 = scmp.ne.s32.totalorder %s862_s21, %s1386_s28  ;;  %p1393_p5 = scmp.lt.s32.totalorder %s862_s21, %s862_s21 }
  0x80   : > { %1020 = vmatpush3.bf16.msra.mxu0 %v1237_v3  ;;  %1139 = vmatpush3.bf16.msra.mxu1 %v1237_v3  ;;  %v1242_v8 = vld [vmem:[%s1680_s20 + $0x58] sm:$0xff]   ;;  %v1244_v10 = vld [vmem:[%s1680_s20 + $0x60] sm:$0xff]   ;;  %v1246_v12 = vld [vmem:[%s1680_s20 + $0x68] sm:$0xff]   ;;  %p1394_p10 = scmp.lt.s32.totalorder %s1386_s28, %s1386_s28 }
  0x81   : > { %1021 = vmatprep.subr.bf16.mxu0 %v1238_v4  ;;  %1132 = vmatprep.subr.bf16.mxu1 %v1238_v4  ;;  %v1243_v9 = vld [vmem:[%s1680_s20 + $0x18] sm:$0xff]   ;;  %v1245_v11 = vld [vmem:[%s1680_s20 + $0x20] sm:$0xff]   ;;  %v1247_v14 = vld [vmem:[%s1680_s20 + $0x28] sm:$0xff]   ;;  %p1388_p1 = pnand %p1387_p8, %p1731_p9 }
  0x82   : > { %v1248_v15 = vld [vmem:[%s1680_s20 + $0x70] sm:$0xff]   ;;  %v1250_v17 = vld [vmem:[%s1680_s20 + $0x78] sm:$0xff]   ;;  %v1264_v25 = vld [vmem:[%s1667_s6 + $0x24] ss:$8 sps:$4 sm:$0xff]   ;;  %p1395_p11 = por %p1394_p10, %p1393_p5 }
  0x83   : > { %v1249_v16 = vld [vmem:[%s1680_s20 + $0x30] sm:$0xff]   ;;  %v1251_v18 = vld [vmem:[%s1680_s20 + $0x38] sm:$0xff]   ;;  %v1266_v26 = vld [vmem:[%s1667_s6 + $0xa4] ss:$8 sps:$4 sm:$0xff]   ;;  %p1389_p4 = pneg %p1388_p1 }
  0x84   : > { %1022 = vmatpush3.bf16.msra.mxu0 %v1239_v5  ;;  %1140 = vmatpush3.bf16.msra.mxu1 %v1239_v5  ;;  %v1258_v21 = vld [vmem:[%s1667_s6 + $0x14] ss:$8 sps:$4 sm:$0xff]   ;;  %v1262_v23 = vld [vmem:[%s1667_s6 + $0x10] ss:$8 sps:$4 sm:$0xff]   ;;  %v1268_v27 = vld [vmem:[%s1667_s6 + $0x20] ss:$8 sps:$4 sm:$0xff]  }
  0x85   : > { %1023 = vmatprep.subr.bf16.mxu0 %v1240_v6  ;;  %1133 = vmatprep.subr.bf16.mxu1 %v1240_v6  ;;  %v1260_v22 = vld [vmem:[%s1667_s6 + $0x94] ss:$8 sps:$4 sm:$0xff]   ;;  %v1263_v24 = vld [vmem:[%s1667_s6 + $0x90] ss:$8 sps:$4 sm:$0xff]   ;;  %v1269_v28 = vld [vmem:[%s1667_s6 + $0xa0] ss:$8 sps:$4 sm:$0xff]   ;;  %p1396_p13 = pnand %p1395_p11, %p1389_p4 }
  0x86   : > { %v1270_v29 = vld [vmem:[%s1667_s6 + $0x34] ss:$8 sps:$4 sm:$0xff]   ;;  %v1274_v31 = vld [vmem:[%s1667_s6 + $0x30] ss:$8 sps:$4 sm:$0xff]   ;;  %v1276_v33 = vld [vmem:[%s1667_s6 + $0x44] ss:$8 sps:$4 sm:$0xff]  }
  0x87   : > { %v1272_v30 = vld [vmem:[%s1667_s6 + $0xb4] ss:$8 sps:$4 sm:$0xff]   ;;  %v1275_v32 = vld [vmem:[%s1667_s6 + $0xb0] ss:$8 sps:$4 sm:$0xff]   ;;  %v1278_v34 = vld [vmem:[%s1667_s6 + $0xc4] ss:$8 sps:$4 sm:$0xff]  }
  0x88   : > { %1024 = vmatpush3.bf16.msra.mxu0 %v1241_v7  ;;  %1141 = vmatpush3.bf16.msra.mxu1 %v1241_v7  ;;  %v1280_v35 = vld [vmem:[%s1667_s6 + $0x40] ss:$8 sps:$4 sm:$0xff]   ;;  %v1282_v37 = vld [vmem:[%s1667_s6 + $0x54] ss:$8 sps:$4 sm:$0xff]   ;;  %v1286_v39 = vld [vmem:[%s1667_s6 + $0x50] ss:$8 sps:$4 sm:$0xff]  }
  0x89   : > { %1025 = vmatprep.subr.bf16.mxu0 %v1242_v8  ;;  %1134 = vmatprep.subr.bf16.mxu1 %v1242_v8  ;;  %v1281_v36 = vld [vmem:[%s1667_s6 + $0xc0] ss:$8 sps:$4 sm:$0xff]   ;;  %v1284_v38 = vld [vmem:[%s1667_s6 + $0xd4] ss:$8 sps:$4 sm:$0xff]   ;;  %v1287_v40 = vld [vmem:[%s1667_s6 + $0xd0] ss:$8 sps:$4 sm:$0xff]  }
  0x8a   : > { %v1288_v41 = vld [vmem:[%s1667_s6 + $0x64] ss:$8 sps:$4 sm:$0xff]   ;;  %v1292_v43 = vld [vmem:[%s1667_s6 + $0x60] ss:$8 sps:$4 sm:$0xff]   ;;  %v1294_v45 = vld [vmem:[%s1667_s6 + $0x74] ss:$8 sps:$4 sm:$0xff]  }
  0x8b   : > { %v1290_v42 = vld [vmem:[%s1667_s6 + $0xe4] ss:$8 sps:$4 sm:$0xff]   ;;  %v1293_v44 = vld [vmem:[%s1667_s6 + $0xe0] ss:$8 sps:$4 sm:$0xff]   ;;  %v1296_v46 = vld [vmem:[%s1667_s6 + $0xf4] ss:$8 sps:$4 sm:$0xff]  }
  0x8c   : > { %1026 = vmatpush3.bf16.msra.mxu0 %v1243_v9  ;;  %1142 = vmatpush3.bf16.msra.mxu1 %v1243_v9  ;;  %v1298_v47 = vld [vmem:[%s1667_s6 + $0x70] ss:$8 sps:$4 sm:$0xff]   ;;  %v272_v51 = vld [vmem:[#allocation8] sm:$0xff] }
  0x8d   : > { %1027 = vmatprep.subr.bf16.mxu0 %v1244_v10  ;;  %1135 = vmatprep.subr.bf16.mxu1 %v1244_v10  ;;  %v1299_v48 = vld [vmem:[%s1667_s6 + $0xf0] ss:$8 sps:$4 sm:$0xff]   ;;  %v288_v53 = vld [vmem:[#allocation8 + $0x80] sm:$0xff] }
  0x8e   : > { %v273_v59 = vld [vmem:[#allocation8 + $0x8] sm:$0xff]  ;;  %v274_v7 = vld [vmem:[#allocation8 + $0x10] sm:$0xff] }
  0x8f   : > { %v289_v61 = vld [vmem:[#allocation8 + $0x88] sm:$0xff]  ;;  %v290_v9 = vld [vmem:[#allocation8 + $0x90] sm:$0xff] }
  0x90   : > { %1028 = vmatpush3.bf16.msra.mxu0 %v1245_v11  ;;  %1143 = vmatpush3.bf16.msra.mxu1 %v1245_v11 }
  0x91   : > { %1029 = vmatprep.subr.bf16.mxu0 %v1246_v12  ;;  %1136 = vmatprep.subr.bf16.mxu1 %v1246_v12 }
  0x94   : > { %1030 = vmatpush3.bf16.msra.mxu0 %v1247_v14  ;;  %1144 = vmatpush3.bf16.msra.mxu1 %v1247_v14 }
  0x95   : > { %1031 = vmatprep.subr.bf16.mxu0 %v1248_v15  ;;  %1137 = vmatprep.subr.bf16.mxu1 %v1248_v15  ;;  %v275_v15 = vld [vmem:[#allocation8 + $0x18] sm:$0xff] }
  0x98   : > { %1032 = vmatpush3.bf16.msra.mxu0 %v1249_v16  ;;  %1145 = vmatpush3.bf16.msra.mxu1 %v1249_v16 }
  0x99   : > { %1033 = vmatprep.subr.bf16.mxu0 %v1250_v17  ;;  %1138 = vmatprep.subr.bf16.mxu1 %v1250_v17  ;;  %v291_v17 = vld [vmem:[#allocation8 + $0x98] sm:$0xff] }
  0x9c   : > { %1034 = vmatpush3.bf16.msra.mxu0 %v1251_v18  ;;  %1146 = vmatpush3.bf16.msra.mxu1 %v1251_v18 }
  0x9f   : > { %660 = vmatmul.mubr.bf16.vlgmr.msra.gmra.mrb[0].mxu0 %v1252_v19  ;;  %724 = vmatmul.mubr.bf16.vlgmr.msra.gmra.mrb[0].mxu1 %v1255_v20 }
  0xa0   : > { %667 = vmatprep.mubr.bf16.mxu0 %v1258_v21  ;;  %731 = vmatprep.mubr.bf16.mxu1 %v1260_v22 }
  0xa7   : > { %668 = vmatmul.mubr.bf16.gmra.mrb[4].mxu0 %v1262_v23  ;;  %732 = vmatmul.mubr.bf16.gmra.mrb[4].mxu1 %v1263_v24 }
  0xa8   : > { %675 = vmatprep.mubr.bf16.mxu0 %v1264_v25  ;;  %739 = vmatprep.mubr.bf16.mxu1 %v1266_v26 }
  0xaf   : > { %676 = vmatmul.mubr.bf16.gmra.mrb[8].mxu0 %v1268_v27  ;;  %740 = vmatmul.mubr.bf16.gmra.mrb[8].mxu1 %v1269_v28  ;;  %v276_v27 = vld [vmem:[#allocation8 + $0x20] sm:$0xff] }
  0xb0   : > { %683 = vmatprep.mubr.bf16.mxu0 %v1270_v29  ;;  %747 = vmatprep.mubr.bf16.mxu1 %v1272_v30  ;;  %v292_v29 = vld [vmem:[#allocation8 + $0xa0] sm:$0xff] }
  0xb7   : > { %684 = vmatmul.mubr.bf16.gmra.mrb[12].mxu0 %v1274_v31  ;;  %748 = vmatmul.mubr.bf16.gmra.mrb[12].mxu1 %v1275_v32 }
  0xb8   : > { %691 = vmatprep.mubr.bf16.mxu0 %v1276_v33  ;;  %755 = vmatprep.mubr.bf16.mxu1 %v1278_v34 }
  0xbf   : > { %692 = vmatmul.mubr.bf16.gmra.mrb[16].mxu0 %v1280_v35  ;;  %756 = vmatmul.mubr.bf16.gmra.mrb[16].mxu1 %v1281_v36  ;;  %v277_v35 = vld [vmem:[#allocation8 + $0x28] sm:$0xff] }
  0xc0   : > { %699 = vmatprep.mubr.bf16.mxu0 %v1282_v37  ;;  %763 = vmatprep.mubr.bf16.mxu1 %v1284_v38  ;;  %v293_v37 = vld [vmem:[#allocation8 + $0xa8] sm:$0xff] }
  0xc7   : > { %700 = vmatmul.mubr.bf16.gmra.mrb[20].mxu0 %v1286_v39  ;;  %764 = vmatmul.mubr.bf16.gmra.mrb[20].mxu1 %v1287_v40 }
  0xc8   : > { %707 = vmatprep.mubr.bf16.mxu0 %v1288_v41  ;;  %771 = vmatprep.mubr.bf16.mxu1 %v1290_v42 }
  0xcf   : > { %708 = vmatmul.mubr.bf16.gmra.mrb[24].mxu0 %v1292_v43  ;;  %772 = vmatmul.mubr.bf16.gmra.mrb[24].mxu1 %v1293_v44 }
  0xd0   : > { %715 = vmatprep.mubr.bf16.mxu0 %v1294_v45  ;;  %779 = vmatprep.mubr.bf16.mxu1 %v1296_v46 }
  0xd7   : > { %716 = vmatmul.mubr.bf16.gmra.mrb[28].mxu0 %v1298_v47  ;;  %780 = vmatmul.mubr.bf16.gmra.mrb[28].mxu1 %v1299_v48  ;;  %v278_v47 = vld [vmem:[#allocation8 + $0x30] sm:$0xff] }
 0x172   : > { %v1035_v49 = vpop.f32.mrb[0].mxu0  ;;  %v1083_v50 = vpop.f32.mrb[0].mxu1 }
 0x173   : > { %v1036_v52 = vpop.f32.mrb[1].mxu0  ;;  %v1084_v54 = vpop.f32.mrb[1].mxu1 }
 0x174   : > { %v1037_v55 = vadd.f32 %v1036_v52, %v1035_v49  ;;  %v1085_v56 = vadd.f32 %v1084_v54, %v1083_v50  ;;  %v1038_v57 = vpop.f32.mrb[2].mxu0  ;;  %v1086_v58 = vpop.f32.mrb[2].mxu1  ;;  %v294_v49 = vld [vmem:[#allocation8 + $0xb0] sm:$0xff] }
 0x175   : > { %v1039_v60 = vpop.f32.mrb[3].mxu0  ;;  %v1087_v62 = vpop.f32.mrb[3].mxu1 }
 0x176   : > { %v788_v63 = vadd.f32 %v1037_v55, %v272_v51  ;;  %v804_v0 = vadd.f32 %v1085_v56, %v288_v53  ;;  %v1040_v1 = vadd.f32 %v1039_v60, %v1038_v57  ;;  %v1088_v2 = vadd.f32 %v1087_v62, %v1086_v58  ;;  %v279_v55 = vld [vmem:[#allocation8 + $0x38] sm:$0xff] }
 0x177   : > { %v295_v57 = vld [vmem:[#allocation8 + $0xb8] sm:$0xff] }
 0x178   : > { %820 = vst [vmem:[#allocation8] sm:$0xff] %v788_v63  ;;  %836 = vst [vmem:[#allocation8 + $0x80] sm:$0xff] %v804_v0  ;;  %v789_v3 = vadd.f32 %v1040_v1, %v273_v59  ;;  %v805_v4 = vadd.f32 %v1088_v2, %v289_v61 }
 0x17a   : > { %821 = vst [vmem:[#allocation8 + $0x8] sm:$0xff] %v789_v3  ;;  %837 = vst [vmem:[#allocation8 + $0x88] sm:$0xff] %v805_v4  ;;  %v1041_v5 = vpop.f32.mrb[4].mxu0  ;;  %v1089_v6 = vpop.f32.mrb[4].mxu1  ;;  %v280_v3 = vld [vmem:[#allocation8 + $0x40] sm:$0xff] }
 0x17b   : > { %v1042_v8 = vpop.f32.mrb[5].mxu0  ;;  %v1090_v10 = vpop.f32.mrb[5].mxu1 }
 0x17c   : > { %v1043_v11 = vadd.f32 %v1042_v8, %v1041_v5  ;;  %v1091_v12 = vadd.f32 %v1090_v10, %v1089_v6  ;;  %v1044_v13 = vpop.f32.mrb[6].mxu0  ;;  %v1092_v14 = vpop.f32.mrb[6].mxu1  ;;  %v296_v5 = vld [vmem:[#allocation8 + $0xc0] sm:$0xff] }
 0x17d   : > { %v1045_v16 = vpop.f32.mrb[7].mxu0  ;;  %v1093_v18 = vpop.f32.mrb[7].mxu1 }
 0x17e   : > { %v790_v19 = vadd.f32 %v1043_v11, %v274_v7  ;;  %v806_v20 = vadd.f32 %v1091_v12, %v290_v9  ;;  %v1046_v21 = vadd.f32 %v1045_v16, %v1044_v13  ;;  %v1094_v22 = vadd.f32 %v1093_v18, %v1092_v14  ;;  %v281_v11 = vld [vmem:[#allocation8 + $0x48] sm:$0xff] }
 0x17f   : > { %v297_v13 = vld [vmem:[#allocation8 + $0xc8] sm:$0xff] }
 0x180   : > { %822 = vst [vmem:[#allocation8 + $0x10] sm:$0xff] %v790_v19  ;;  %838 = vst [vmem:[#allocation8 + $0x90] sm:$0xff] %v806_v20  ;;  %v791_v23 = vadd.f32 %v1046_v21, %v275_v15  ;;  %v807_v24 = vadd.f32 %v1094_v22, %v291_v17 }
 0x182   : > { %823 = vst [vmem:[#allocation8 + $0x18] sm:$0xff] %v791_v23  ;;  %839 = vst [vmem:[#allocation8 + $0x98] sm:$0xff] %v807_v24  ;;  %v1047_v25 = vpop.f32.mrb[8].mxu0  ;;  %v1095_v26 = vpop.f32.mrb[8].mxu1  ;;  %v282_v23 = vld [vmem:[#allocation8 + $0x50] sm:$0xff] }
 0x183   : > { %v1048_v28 = vpop.f32.mrb[9].mxu0  ;;  %v1096_v30 = vpop.f32.mrb[9].mxu1 }
 0x184   : > { %v1049_v31 = vadd.f32 %v1048_v28, %v1047_v25  ;;  %v1097_v32 = vadd.f32 %v1096_v30, %v1095_v26  ;;  %v1050_v33 = vpop.f32.mrb[10].mxu0  ;;  %v1098_v34 = vpop.f32.mrb[10].mxu1  ;;  %v298_v25 = vld [vmem:[#allocation8 + $0xd0] sm:$0xff] }
 0x185   : > { %v1051_v36 = vpop.f32.mrb[11].mxu0  ;;  %v1099_v38 = vpop.f32.mrb[11].mxu1 }
 0x186   : > { %v792_v39 = vadd.f32 %v1049_v31, %v276_v27  ;;  %v808_v40 = vadd.f32 %v1097_v32, %v292_v29  ;;  %v1052_v41 = vadd.f32 %v1051_v36, %v1050_v33  ;;  %v1100_v42 = vadd.f32 %v1099_v38, %v1098_v34  ;;  %v283_v31 = vld [vmem:[#allocation8 + $0x58] sm:$0xff] }
 0x187   : > { %v299_v33 = vld [vmem:[#allocation8 + $0xd8] sm:$0xff] }
 0x188   : > { %824 = vst [vmem:[#allocation8 + $0x20] sm:$0xff] %v792_v39  ;;  %840 = vst [vmem:[#allocation8 + $0xa0] sm:$0xff] %v808_v40  ;;  %v793_v43 = vadd.f32 %v1052_v41, %v277_v35  ;;  %v809_v44 = vadd.f32 %v1100_v42, %v293_v37 }
 0x18a   : > { %825 = vst [vmem:[#allocation8 + $0x28] sm:$0xff] %v793_v43  ;;  %841 = vst [vmem:[#allocation8 + $0xa8] sm:$0xff] %v809_v44  ;;  %v1053_v45 = vpop.f32.mrb[12].mxu0  ;;  %v1101_v46 = vpop.f32.mrb[12].mxu1  ;;  %v284_v43 = vld [vmem:[#allocation8 + $0x60] sm:$0xff] }
 0x18b   : > { %v1054_v48 = vpop.f32.mrb[13].mxu0  ;;  %v1102_v50 = vpop.f32.mrb[13].mxu1 }
 0x18c   : > { %v1055_v51 = vadd.f32 %v1054_v48, %v1053_v45  ;;  %v1103_v52 = vadd.f32 %v1102_v50, %v1101_v46  ;;  %v1056_v53 = vpop.f32.mrb[14].mxu0  ;;  %v1104_v54 = vpop.f32.mrb[14].mxu1  ;;  %v300_v45 = vld [vmem:[#allocation8 + $0xe0] sm:$0xff] }
 0x18d   : > { %v1057_v56 = vpop.f32.mrb[15].mxu0  ;;  %v1105_v58 = vpop.f32.mrb[15].mxu1 }
 0x18e   : > { %v794_v59 = vadd.f32 %v1055_v51, %v278_v47  ;;  %v810_v60 = vadd.f32 %v1103_v52, %v294_v49  ;;  %v1058_v61 = vadd.f32 %v1057_v56, %v1056_v53  ;;  %v1106_v62 = vadd.f32 %v1105_v58, %v1104_v54  ;;  %v285_v51 = vld [vmem:[#allocation8 + $0x68] sm:$0xff] }
 0x18f   : > { %v301_v53 = vld [vmem:[#allocation8 + $0xe8] sm:$0xff] }
 0x190   : > { %826 = vst [vmem:[#allocation8 + $0x30] sm:$0xff] %v794_v59  ;;  %842 = vst [vmem:[#allocation8 + $0xb0] sm:$0xff] %v810_v60  ;;  %v795_v63 = vadd.f32 %v1058_v61, %v279_v55  ;;  %v811_v0 = vadd.f32 %v1106_v62, %v295_v57 }
 0x192   : > { %827 = vst [vmem:[#allocation8 + $0x38] sm:$0xff] %v795_v63  ;;  %843 = vst [vmem:[#allocation8 + $0xb8] sm:$0xff] %v811_v0  ;;  %v1059_v1 = vpop.f32.mrb[16].mxu0  ;;  %v1107_v2 = vpop.f32.mrb[16].mxu1  ;;  %v286_v63 = vld [vmem:[#allocation8 + $0x70] sm:$0xff] }
 0x193   : > { %v1060_v4 = vpop.f32.mrb[17].mxu0  ;;  %v1108_v6 = vpop.f32.mrb[17].mxu1 }
 0x194   : > { %v1061_v7 = vadd.f32 %v1060_v4, %v1059_v1  ;;  %v1109_v8 = vadd.f32 %v1108_v6, %v1107_v2  ;;  %v1062_v9 = vpop.f32.mrb[18].mxu0  ;;  %v1110_v10 = vpop.f32.mrb[18].mxu1  ;;  %v302_v1 = vld [vmem:[#allocation8 + $0xf0] sm:$0xff] }
 0x195   : > { %v1063_v12 = vpop.f32.mrb[19].mxu0  ;;  %v1111_v14 = vpop.f32.mrb[19].mxu1 }
 0x196   : > { %v796_v15 = vadd.f32 %v1061_v7, %v280_v3  ;;  %v812_v16 = vadd.f32 %v1109_v8, %v296_v5  ;;  %v1064_v17 = vadd.f32 %v1063_v12, %v1062_v9  ;;  %v1112_v18 = vadd.f32 %v1111_v14, %v1110_v10  ;;  %v287_v7 = vld [vmem:[#allocation8 + $0x78] sm:$0xff] }
 0x197   : > { %v303_v9 = vld [vmem:[#allocation8 + $0xf8] sm:$0xff] }
 0x198   : > { %828 = vst [vmem:[#allocation8 + $0x40] sm:$0xff] %v796_v15  ;;  %844 = vst [vmem:[#allocation8 + $0xc0] sm:$0xff] %v812_v16  ;;  %v797_v19 = vadd.f32 %v1064_v17, %v281_v11  ;;  %v813_v20 = vadd.f32 %v1112_v18, %v297_v13 }
 0x19a   : > { %829 = vst [vmem:[#allocation8 + $0x48] sm:$0xff] %v797_v19  ;;  %845 = vst [vmem:[#allocation8 + $0xc8] sm:$0xff] %v813_v20  ;;  %v1065_v21 = vpop.f32.mrb[20].mxu0  ;;  %v1113_v22 = vpop.f32.mrb[20].mxu1 }
 0x19b   : > { %v1066_v24 = vpop.f32.mrb[21].mxu0  ;;  %v1114_v26 = vpop.f32.mrb[21].mxu1 }
 0x19c   : > { %v1067_v27 = vadd.f32 %v1066_v24, %v1065_v21  ;;  %v1115_v28 = vadd.f32 %v1114_v26, %v1113_v22  ;;  %v1068_v29 = vpop.f32.mrb[22].mxu0  ;;  %v1116_v30 = vpop.f32.mrb[22].mxu1 }
 0x19d   : > { %v1069_v32 = vpop.f32.mrb[23].mxu0  ;;  %v1117_v34 = vpop.f32.mrb[23].mxu1 }
 0x19e   : > { %v798_v35 = vadd.f32 %v1067_v27, %v282_v23  ;;  %v814_v36 = vadd.f32 %v1115_v28, %v298_v25  ;;  %v1070_v37 = vadd.f32 %v1069_v32, %v1068_v29  ;;  %v1118_v38 = vadd.f32 %v1117_v34, %v1116_v30 }
 0x1a0   : > { %830 = vst [vmem:[#allocation8 + $0x50] sm:$0xff] %v798_v35  ;;  %846 = vst [vmem:[#allocation8 + $0xd0] sm:$0xff] %v814_v36  ;;  %v799_v39 = vadd.f32 %v1070_v37, %v283_v31  ;;  %v815_v40 = vadd.f32 %v1118_v38, %v299_v33 }
 0x1a2   : > { %831 = vst [vmem:[#allocation8 + $0x58] sm:$0xff] %v799_v39  ;;  %847 = vst [vmem:[#allocation8 + $0xd8] sm:$0xff] %v815_v40  ;;  %v1071_v41 = vpop.f32.mrb[24].mxu0  ;;  %v1119_v42 = vpop.f32.mrb[24].mxu1 }
 0x1a3   : > { %v1072_v44 = vpop.f32.mrb[25].mxu0  ;;  %v1120_v46 = vpop.f32.mrb[25].mxu1 }
 0x1a4   : > { %v1073_v47 = vadd.f32 %v1072_v44, %v1071_v41  ;;  %v1121_v48 = vadd.f32 %v1120_v46, %v1119_v42  ;;  %v1074_v49 = vpop.f32.mrb[26].mxu0  ;;  %v1122_v50 = vpop.f32.mrb[26].mxu1 }
 0x1a5   : > { %v1075_v52 = vpop.f32.mrb[27].mxu0  ;;  %v1123_v54 = vpop.f32.mrb[27].mxu1 }
 0x1a6   : > { %v800_v55 = vadd.f32 %v1073_v47, %v284_v43  ;;  %v816_v56 = vadd.f32 %v1121_v48, %v300_v45  ;;  %v1076_v57 = vadd.f32 %v1075_v52, %v1074_v49  ;;  %v1124_v58 = vadd.f32 %v1123_v54, %v1122_v50 }
 0x1a8   : > { %832 = vst [vmem:[#allocation8 + $0x60] sm:$0xff] %v800_v55  ;;  %848 = vst [vmem:[#allocation8 + $0xe0] sm:$0xff] %v816_v56  ;;  %v801_v59 = vadd.f32 %v1076_v57, %v285_v51  ;;  %v817_v60 = vadd.f32 %v1124_v58, %v301_v53 }
 0x1aa   : > { %833 = vst [vmem:[#allocation8 + $0x68] sm:$0xff] %v801_v59  ;;  %849 = vst [vmem:[#allocation8 + $0xe8] sm:$0xff] %v817_v60  ;;  %v1077_v61 = vpop.f32.mrb[28].mxu0  ;;  %v1125_v62 = vpop.f32.mrb[28].mxu1 }
 0x1ab   : > { %v1078_v0 = vpop.f32.mrb[29].mxu0  ;;  %v1126_v2 = vpop.f32.mrb[29].mxu1 }
 0x1ac   : > { %v1079_v3 = vadd.f32 %v1078_v0, %v1077_v61  ;;  %v1127_v4 = vadd.f32 %v1126_v2, %v1125_v62  ;;  %v1080_v5 = vpop.f32.mrb[30].mxu0  ;;  %v1128_v6 = vpop.f32.mrb[30].mxu1 }
 0x1ad   : > { %v1081_v8 = vpop.f32.mrb[31].mxu0  ;;  %v1129_v10 = vpop.f32.mrb[31].mxu1 }
 0x1ae   : > { %v802_v11 = vadd.f32 %v1079_v3, %v286_v63  ;;  %v818_v12 = vadd.f32 %v1127_v4, %v302_v1  ;;  %v1082_v13 = vadd.f32 %v1081_v8, %v1080_v5  ;;  %v1130_v14 = vadd.f32 %v1129_v10, %v1128_v6 }
 0x1b0   : > { %834 = vst [vmem:[#allocation8 + $0x70] sm:$0xff] %v802_v11  ;;  %850 = vst [vmem:[#allocation8 + $0xf0] sm:$0xff] %v818_v12  ;;  %v803_v15 = vadd.f32 %v1082_v13, %v287_v7  ;;  %v819_v16 = vadd.f32 %v1130_v14, %v303_v9 }
 0x1b2   : > { %835 = vst [vmem:[#allocation8 + $0x78] sm:$0xff] %v803_v15  ;;  %851 = vst [vmem:[#allocation8 + $0xf8] sm:$0xff] %v819_v16 }
 0x1b3   : > { %1399 = shalt.err (!%p1396_p13)
}
 0x1b4   : > { %s1400_s30 = scalar_lea.hbm %s1778_s3, 4096 }
 0x1b5   : > { %p1401_p2 = scmp.ne.s32.totalorder %s1778_s3, %s1400_s30  ;;  %p1406_p0 = scmp.lt.u32.totalorder %s1400_s30, %s1778_s3 }
 0x1b7   : > { %p1402_p3 = pnand %p1401_p2, %p1731_p9 }
 0x1b9   : > { %p1403_p12 = pneg %p1402_p3 }
 0x1bb   : > { %p1408_p6 = pnand %p1406_p0, %p1403_p12 }
 0x1bd   : > { %1411 = shalt.err (!%p1408_p6)
}
 0x1be   : > { %s1480_s11 = smov 128   ;;  %s1481_s22 = smov 8  }
 0x1bf   : > { %1158 = dma.vmem_to_hbm [thread:$0]  (%p1731_p9), %s862_s21, 4096, %s1778_s3, [#allocation4], %s1480_s11, %s1480_s11, %s1481_s22  }
 0x1c0   : > { %1445 = dma.done.wait (%p1731_p9), [#allocation4], 4096  }
 0x1c1   : > { %1447 = vsyncadd (%p1731_p9), [#allocation4], 4294963200 }
 0x1c2 PF: > { %s18_s17 = sadd.s32 1, %s1470_s17   ;;  %s1792_s23 = smov %s1621_s12 }
 0x1c3   : > { %p15_p7 = scmp.ge.s32.totalorder %s18_s17, 16   ;;  %s1793_s12 = smov %s1454_s13 }
 0x1c4   : > { %s1794_s13 = smov %s1458_s14  ;;  %s1795_s14 = smov %s1792_s23 }
 0x1c5   : > { %s1796_s15 = smov %s1466_s16  ;;  %s1797_s16 = smov %s1799_s7 }
 0x1c6   :  { %17 = sbr.rel (!%p15_p7) target bundleno = 6 (0x6), region = 83 }
 0x1cd   :  { %877 = vsyncpa [#allocation3], 1 }
 0x1ce   :  { %879 = vsyncpa [#allocation3 + $0x1], 1 }
 0x1cf   :  { %880 = vsyncpa [#allocation6], 1 }
 0x1d0   :  { %881 = vsyncpa [#allocation4], 1 }
 0x1d1   :  { %883 = vsyncpa [#allocation4 + $0x1], 1 }

</bundles_post_ra>
